<compile_context>
chip_gen: v7x
topology: tpu7x:2x2x1
jax: 0.10.0
libtpu: 0.0.40
codegen_flags: <defaults>
</compile_context>

<pallas_src>
import jax
import jax.numpy as jnp
from jax.experimental import pallas as pl
from jax.experimental.pallas import tpu as pltpu


def _softplus(z):
    # Branch-free, numerically stable softplus. Differs from torch's
    # threshold-20 variant by < exp(-20) ~ 2e-9 (well inside tolerance).
    return jnp.maximum(z, 0.0) + jnp.log1p(jnp.exp(-jnp.abs(z)))


def _round_up(n, m):
    return ((n + m - 1) // m) * m


# ---------------------------------------------------------------------------
# Kernel: one batch tile per grid step.
#   p_ref : (8, 128)  packed parameter slab (resident across grid steps)
#   x_ref : (8, TB)   input tile, features on sublanes, batch on lanes
#   o_ref : (1, TB)   lane-dense output tile
# ---------------------------------------------------------------------------
def mlp_kernel(p_ref, x_ref, o_ref):
    p = p_ref[...]                       # single vreg
    x = x_ref[...]                       # (8, TB)

    w1 = p[:, 0:8]                       # (8, 8): rows 0..5 real, rest 0
    w2 = p[:, 8:16]                      # (8, 8): rows 0..3 / cols 0..5 real
    w3 = p[:, 16:24]                     # (8, 8): row 0 / cols 0..3 real
    b1 = p[:, 24:25]                     # (8, 1)
    b2 = p[:, 25:26]                     # (8, 1)
    b3 = p[:, 26:27]                     # (8, 1)

    h = _softplus(jnp.dot(w1, x, preferred_element_type=jnp.float32) + b1)
    h = _softplus(jnp.dot(w2, h, preferred_element_type=jnp.float32) + b2)
    h = _softplus(jnp.dot(w3, h, preferred_element_type=jnp.float32) + b3)

    o_ref[...] = h[0:1, :].astype(o_ref.dtype)   # only row 0 is the real output


# ---------------------------------------------------------------------------
# Parameter packing: torch-convention weights (out, in) and biases (out,)
# packed into one (8, 128) f32 slab (~4 KiB => a single DMA / one vreg).
# ---------------------------------------------------------------------------
def pack_params(w1, b1, w2, b2, w3, b3):
    slab = jnp.zeros((8, 128), jnp.float32)

    def put_w(s, w, col0):
        o, i = w.shape
        return s.at[:o, col0:col0 + i].set(w.astype(jnp.float32))

    slab = put_w(slab, w1, 0)    # (6, 8)  -> rows 0..5, cols 0..7
    slab = put_w(slab, w2, 8)    # (4, 6)  -> rows 0..3, cols 8..13
    slab = put_w(slab, w3, 16)   # (1, 4)  -> row  0,    cols 16..19
    slab = slab.at[:6, 24].set(b1.astype(jnp.float32))
    slab = slab.at[:4, 25].set(b2.astype(jnp.float32))
    slab = slab.at[:1, 26].set(b3.astype(jnp.float32))
    return slab


# ---------------------------------------------------------------------------
# Wrapper: (B, 8) -> (B, 1), matching the PyTorch module's forward.
# ---------------------------------------------------------------------------
def mlp_forward(x, params, *, batch_tile=8192):
    """x: (B, 8) f32. params: packed (8, 128) slab from pack_params."""
    B, F = x.shape
    assert F == 8, "Model expects 8 input features"

    # Layout plumbing: present batch on the lane axis to the kernel.
    xt = jnp.transpose(x).astype(jnp.float32)          # (8, B)

    # Batch tile: multiple of 256 (fills v6e/v7x 256-wide MXU; also a multiple
    # of 128 for v5e). Tiny tiles => trivially fits v7x's 64 MiB VMEM even
    # with double-buffering, so no vmem_limit override needed.
    tb = min(batch_tile, _round_up(B, 256))
    b_padded = _round_up(B, tb)
    if b_padded != B:
        xt = jnp.pad(xt, ((0, 0), (0, b_padded - B)))

    grid = (b_padded // tb,)

    out = pl.pallas_call(
        mlp_kernel,
        out_shape=jax.ShapeDtypeStruct((1, b_padded), jnp.float32),
        grid_spec=pltpu.PrefetchScalarGridSpec(
            num_scalar_prefetch=0,
            grid=grid,
            in_specs=[
                # Parameter slab: constant block index -> DMA'd once, resident.
                pl.BlockSpec((8, 128), lambda i: (0, 0)),
                # Input stream: double-buffered (8, tb) tiles.
                pl.BlockSpec((8, tb), lambda i: (0, i)),
            ],
            # Lane-dense output stream.
            out_specs=pl.BlockSpec((1, tb), lambda i: (0, i)),
        ),
        compiler_params=pltpu.CompilerParams(
            dimension_semantics=("parallel",),
        ),
    )(params, xt)

    # Back to the PyTorch output layout (B, 1).
    return jnp.transpose(out[:, :B])


# ---------------------------------------------------------------------------
# Deterministic init mimicking torch.nn.Linear defaults:
#   weight (out, in), bias (out,), both U(-1/sqrt(in), 1/sqrt(in)).
# ---------------------------------------------------------------------------
def _init_linear(key, in_features, out_features):
    kw, kb = jax.random.split(key)
    bound = 1.0 / jnp.sqrt(jnp.float32(in_features))
    w = jax.random.uniform(kw, (out_features, in_features), jnp.float32, -bound, bound)
    b = jax.random.uniform(kb, (out_features,), jnp.float32, -bound, bound)
    return w, b


if __name__ == "__main__":
    key = jax.random.PRNGKey(0)
    kx1, kx2, k1, k2, k3 = jax.random.split(key, 5)

    w1, b1 = _init_linear(k1, 8, 6)
    w2, b2 = _init_linear(k2, 6, 4)
    w3, b3 = _init_linear(k3, 4, 1)
    params = pack_params(w1, b1, w2, b2, w3, b3)

    def ref(x):
        h = _softplus(x @ w1.T + b1)
        h = _softplus(h @ w2.T + b2)
        return _softplus(h @ w3.T + b3)

    ok = True
    # Small batch (as implied by the module) and an uneven larger batch to
    # exercise the multi-step grid + padding path.
    for batch, kx in ((8, kx1), (1000, kx2)):
        x = jax.random.normal(kx, (batch, 8), jnp.float32)
        out = jax.block_until_ready(mlp_forward(x, params, batch_tile=512))
        expected = ref(x)
        ok &= out.shape == (batch, 1)
        ok &= bool(jnp.allclose(out, expected, atol=1e-5, rtol=1e-5))

    if ok:
        print("KERNEL_OK")
    else:
        print("KERNEL_MISMATCH")
</pallas_src>

<mosaic_0001>
module attributes {stable_mosaic.version = 11 : i64} {
  func.func @mlp_kernel(%arg0: i32, %arg1: memref<8x128xf32, #tpu.memory_space<vmem>>, %arg2: memref<8x256xf32, #tpu.memory_space<vmem>>, %arg3: memref<1x256xf32, #tpu.memory_space<vmem>>) attributes {dimension_semantics = [#tpu.dimension_semantics<parallel>], iteration_bounds = array<i64: 1>, scalar_prefetch = 0 : i64, scratch_operands = 0 : i64, tpu.core_type = #tpu.core_type<tc>, window_params = [{pipeline_mode = #tpu.pipeline_mode<synchronous>, transform_indices = @transform_0, window_bounds = array<i64: 8, 128>}, {transform_indices = @transform_1, window_bounds = array<i64: 8, 256>}, {transform_indices = @transform_2, window_bounds = array<i64: 1, 256>}]} {
    %c0 = arith.constant 0 : index
    %c0_0 = arith.constant 0 : index
    %0 = vector.load %arg1[%c0, %c0_0] : memref<8x128xf32, #tpu.memory_space<vmem>>, vector<8x128xf32>
    %c0_1 = arith.constant 0 : index
    %c0_2 = arith.constant 0 : index
    %1 = vector.load %arg2[%c0_1, %c0_2] : memref<8x256xf32, #tpu.memory_space<vmem>>, vector<8x256xf32>
    %2 = vector.extract_strided_slice %0 {offsets = [0, 0], sizes = [8, 8], strides = [1, 1]} : vector<8x128xf32> to vector<8x8xf32>
    %3 = vector.extract_strided_slice %0 {offsets = [0, 8], sizes = [8, 8], strides = [1, 1]} : vector<8x128xf32> to vector<8x8xf32>
    %4 = vector.extract_strided_slice %0 {offsets = [0, 16], sizes = [8, 8], strides = [1, 1]} : vector<8x128xf32> to vector<8x8xf32>
    %5 = vector.extract_strided_slice %0 {offsets = [0, 24], sizes = [8, 1], strides = [1, 1]} : vector<8x128xf32> to vector<8x1xf32>
    %6 = vector.extract_strided_slice %0 {offsets = [0, 25], sizes = [8, 1], strides = [1, 1]} : vector<8x128xf32> to vector<8x1xf32>
    %7 = vector.extract_strided_slice %0 {offsets = [0, 26], sizes = [8, 1], strides = [1, 1]} : vector<8x128xf32> to vector<8x1xf32>
    %cst = arith.constant dense<0.000000e+00> : vector<8x256xf32>
    %8 = tpu.matmul %2, %1, %cst {dimension_numbers = #tpu.dot_dimension_numbers<[1], [0], [0], [1], [0, 0, 1, 1], [], []>} : vector<8x8xf32>, vector<8x256xf32>, vector<8x256xf32> -> vector<8x256xf32>
    %9 = vector.broadcast %5 : vector<8x1xf32> to vector<8x256xf32>
    %10 = arith.addf %8, %9 : vector<8x256xf32>
    %cst_3 = arith.constant 0.000000e+00 : f32
    %11 = vector.broadcast %cst_3 : f32 to vector<8x256xf32>
    %12 = arith.maximumf %10, %11 : vector<8x256xf32>
    %13 = math.absf %10 : vector<8x256xf32>
    %cst_4 = arith.constant 0.000000e+00 : f32
    %14 = vector.broadcast %cst_4 : f32 to vector<8x256xf32>
    %15 = arith.subf %14, %13 : vector<8x256xf32>
    %16 = math.exp %15 : vector<8x256xf32>
    %17 = math.log1p %16 : vector<8x256xf32>
    %18 = arith.addf %12, %17 : vector<8x256xf32>
    %cst_5 = arith.constant dense<0.000000e+00> : vector<8x256xf32>
    %19 = tpu.matmul %3, %18, %cst_5 {dimension_numbers = #tpu.dot_dimension_numbers<[1], [0], [0], [1], [0, 0, 1, 1], [], []>} : vector<8x8xf32>, vector<8x256xf32>, vector<8x256xf32> -> vector<8x256xf32>
    %20 = vector.broadcast %6 : vector<8x1xf32> to vector<8x256xf32>
    %21 = arith.addf %19, %20 : vector<8x256xf32>
    %cst_6 = arith.constant 0.000000e+00 : f32
    %22 = vector.broadcast %cst_6 : f32 to vector<8x256xf32>
    %23 = arith.maximumf %21, %22 : vector<8x256xf32>
    %24 = math.absf %21 : vector<8x256xf32>
    %cst_7 = arith.constant 0.000000e+00 : f32
    %25 = vector.broadcast %cst_7 : f32 to vector<8x256xf32>
    %26 = arith.subf %25, %24 : vector<8x256xf32>
    %27 = math.exp %26 : vector<8x256xf32>
    %28 = math.log1p %27 : vector<8x256xf32>
    %29 = arith.addf %23, %28 : vector<8x256xf32>
    %cst_8 = arith.constant dense<0.000000e+00> : vector<8x256xf32>
    %30 = tpu.matmul %4, %29, %cst_8 {dimension_numbers = #tpu.dot_dimension_numbers<[1], [0], [0], [1], [0, 0, 1, 1], [], []>} : vector<8x8xf32>, vector<8x256xf32>, vector<8x256xf32> -> vector<8x256xf32>
    %31 = vector.broadcast %7 : vector<8x1xf32> to vector<8x256xf32>
    %32 = arith.addf %30, %31 : vector<8x256xf32>
    %cst_9 = arith.constant 0.000000e+00 : f32
    %33 = vector.broadcast %cst_9 : f32 to vector<8x256xf32>
    %34 = arith.maximumf %32, %33 : vector<8x256xf32>
    %35 = math.absf %32 : vector<8x256xf32>
    %cst_10 = arith.constant 0.000000e+00 : f32
    %36 = vector.broadcast %cst_10 : f32 to vector<8x256xf32>
    %37 = arith.subf %36, %35 : vector<8x256xf32>
    %38 = math.exp %37 : vector<8x256xf32>
    %39 = math.log1p %38 : vector<8x256xf32>
    %40 = arith.addf %34, %39 : vector<8x256xf32>
    %41 = vector.extract_strided_slice %40 {offsets = [0, 0], sizes = [1, 256], strides = [1, 1]} : vector<8x256xf32> to vector<1x256xf32>
    %c0_11 = arith.constant 0 : index
    %c0_12 = arith.constant 0 : index
    %42 = vector.load %arg3[%c0_11, %c0_12] : memref<1x256xf32, #tpu.memory_space<vmem>>, vector<1x256xf32>
    tpu.vector_store %arg3[%c0_11, %c0_12], %41 {strides = array<i32>} : memref<1x256xf32, #tpu.memory_space<vmem>>, vector<1x256xf32>,
    return
  }
  func.func @transform_0(%arg0: i32) -> (i32, i32) {
    %c0_i32 = arith.constant 0 : i32
    %c0_i32_0 = arith.constant 0 : i32
    %c0_i32_1 = arith.constant 0 : i32
    return %c0_i32, %c0_i32_0 : i32, i32
  }
  func.func @transform_1(%arg0: i32) -> (i32, i32) {
    %c0_i32 = arith.constant 0 : i32
    %c0_i32_0 = arith.constant 0 : i32
    return %c0_i32, %arg0 : i32, i32
  }
  func.func @transform_2(%arg0: i32) -> (i32, i32) {
    %c0_i32 = arith.constant 0 : i32
    %c0_i32_0 = arith.constant 0 : i32
    return %c0_i32, %arg0 : i32, i32
  }
}

</mosaic_0001>

<bundles_post_ra>
// kernel: tpu_custom_call.1
= control target key start
LH: loop header
LB: loop body
LE: loop exit
PB: predicated region body
PF: predicated region fallthrough
CT: control target
= control target key end

     0   :  { %7 = vsyncpa [#allocation3], 0  ;;  %s581_s0 = inlined_call_operand.hbm [shape: f32[8,128], index: 0, kind: input, shape index: {}]   ;;  %s582_s1 = inlined_call_operand.hbm [shape: f32[8,256], index: 1, kind: input, shape index: {}]   ;;  %s583_s2 = inlined_call_operand.hbm [shape: f32[1,256], index: 2, kind: output, shape index: {}]  }
   0x1   :  { %8 = vsyncpa [#allocation6], 0 }
   0x2   :  { %9 = vsyncpa [#allocation4], 0  ;;  %s517_s9 = smov [#allocation2]   ;;  %s518_s11 = smov [#allocation5]  }
   0x3   :  { %s16_s10 = sshll.u32 %s517_s9, 4  ;;  %s26_s12 = sshll.u32 %s518_s11, 4  ;;  %s17_s10 = int_to_ptr.vmem [resolvable:$true] %s16_s10  ;;  %s27_s12 = int_to_ptr.vmem [resolvable:$true] %s26_s12 }
   0x4   :  { %s445_s15 = scalar_lea.hbm %s581_s0, 128 }
   0x5   :  { %p446_p0 = scmp.ne.s32.totalorder %s581_s0, %s445_s15  ;;  %p449_p1 = scmp.lt.u32.totalorder %s445_s15, %s581_s0 }
   0x7   :  { %p451_p2 = pnand %p449_p1, %p446_p0 }
   0x9   :  { %454 = shalt.err (!%p451_p2)
}
   0xa   :  { %s455_s20 = scalar_lea.vmem %s17_s10, 128  ;;  %p460_p4 = scmp.lt.s32.totalorder %s17_s10, %s17_s10 }
   0xb   :  { %p456_p3 = scmp.ne.s32.totalorder %s17_s10, %s455_s20  ;;  %p461_p5 = scmp.lt.s32.totalorder %s455_s20, %s455_s20 }
   0xd   :  { %p462_p6 = por %p461_p5, %p460_p4 }
   0xf   :  { %p463_p7 = pnand %p462_p6, %p456_p3 }
  0x11   :  { %466 = shalt.err (!%p463_p7)
}
  0x12   :  { %19 = dma.hbm_to_vmem [thread:$0]  %s581_s0, 128, %s17_s10, [#allocation3]  }
  0x13   :  { %s467_s25 = scalar_lea.hbm %s582_s1, 256 }
  0x14   :  { %p468_p8 = scmp.ne.s32.totalorder %s582_s1, %s467_s25  ;;  %p471_p9 = scmp.lt.u32.totalorder %s467_s25, %s582_s1 }
  0x16   :  { %p473_p10 = pnand %p471_p9, %p468_p8 }
  0x18   :  { %476 = shalt.err (!%p473_p10)
}
  0x19   :  { %s477_s30 = scalar_lea.vmem %s27_s12, 256  ;;  %p482_p12 = scmp.lt.s32.totalorder %s27_s12, %s27_s12 }
  0x1a   :  { %p478_p11 = scmp.ne.s32.totalorder %s27_s12, %s477_s30  ;;  %p483_p13 = scmp.lt.s32.totalorder %s477_s30, %s477_s30 }
  0x1c   :  { %p484_p0 = por %p483_p13, %p482_p12 }
  0x1e   :  { %p485_p1 = pnand %p484_p0, %p478_p11 }
  0x20   :  { %488 = shalt.err (!%p485_p1)
}
  0x21   :  { %29 = dma.hbm_to_vmem [thread:$0]  %s582_s1, 256, %s27_s12, [#allocation6]  }
  0x22   :  { %511 = dma.done.wait [#allocation3], 128  }
  0x23   :  { %512 = vsyncadd [#allocation3], 4294967168 }
  0x24   :  { %513 = dma.done.wait [#allocation6], 256  }
  0x25   :  { %514 = vsyncadd [#allocation6], 4294967040  ;;  %v519_v0 = vmov 0.0   ;;  %v520_v1 = vmov 24   ;;  %v38_v2 = vld [vmem:[#allocation5 + $0x8] sm:$0xff]  ;;  %v37_v3 = vld [vmem:[#allocation5] sm:$0xff] }
  0x26   :  { %111 = vmatprep.mubr.f32.mxu0 %v519_v0  ;;  %418 = vset.pattern.permute.xlu0 %v520_v1  ;;  %v36_v4 = vld [vmem:[#allocation2] sm:$0xff]  ;;  %vm44_vm0 = vcmask 64512   ;;  %s521_s1 = smov 120   ;;  %v522_v5 = vmov 25   ;;  %s523_s4 = smov 112   ;;  %v524_v40 = vmov 26  }
  0x27   :  { %220 = vmatprep.mubr.f32.mxu1 %v519_v0  ;;  %47 = vmatprep.subr.mxu0 %v38_v2  ;;  %s526_s5 = smov [#allocation7]  }
  0x28   :  { %41 = vperm.xlu0 %418, %v36_v4   ;;  %48 = vmatpush1.msra.mxu0 %v37_v3  ;;  %s395_s6 = sshll.u32 %s526_s5, 4  ;;  %s396_s6 = int_to_ptr.vmem [resolvable:$true] %s395_s6 }
  0x29   :  { %405 = vmatmul.mubr.msk.f32.vlgmr.msra.gmra.mrb[0].mxu0 %vm44_vm0, %v36_v4  ;;  %419 = vset.pattern.permute.xlu1 %v522_v5  ;;  %s489_s7 = scalar_lea.vmem %s396_s6, 32  ;;  %p494_p3 = scmp.lt.s32.totalorder %s396_s6, %s396_s6 }
  0x2a   :  { %329 = vmatprep.mubr.f32.mxu0 %v519_v0  ;;  %149 = vperm.xlu1 %419, %v36_v4   ;;  %p490_p2 = scmp.ne.s32.totalorder %s396_s6, %s489_s7  ;;  %p495_p4 = scmp.lt.s32.totalorder %s489_s7, %s489_s7 }
  0x2c   :  { %152 = vrot.lane.b32.xlu0 %v36_v4, %s521_s1  ;;  %p496_p5 = por %p495_p4, %p494_p3 }
  0x2d   :  { %420 = vset.pattern.permute.xlu0 %v524_v40 }
  0x2e   :  { %261 = vrot.lane.b32.xlu1 %v36_v4, %s523_s4  ;;  %p497_p6 = pnand %p496_p5, %p490_p2 }
  0x30   :  { %258 = vperm.xlu0 %420, %v36_v4  }
  0xa7   :  { %v42_v6 = vpop.permute.xlu0 %41 }
  0xa9   :  { %v150_v41 = vpop.permute.xlu1 %149 }
  0xab   :  { %v153_v38 = vpop.permute.xlu0 %152 }
  0xfc   :  { %v113_v7 = vpop.f32.mrb[0].mxu0 }
  0xfd   :  { %v114_v8 = vadd.f32 %v113_v7, %v42_v6  ;;  %v115_v9 = vpop.f32.mrb[1].mxu0 }
  0xfe   :  { %v116_v10 = vadd.f32 %v115_v9, %v42_v6 }
  0xff   :  { %v120_v11 = vand.u32 2147483647, %v114_v8  ;;  %v118_v35 = vmax.f32 %v114_v8, 0.0 }
 0x100   :  { %v121_v12 = vand.u32 2147483647, %v116_v10  ;;  %v119_v33 = vmax.f32 %v116_v10, 0.0  ;;  %v262_v10 = vpop.permute.xlu1 %261 }
 0x101   :  { %v122_v13 = vsub.f32 0.0, %v120_v11  ;;  %v259_v11 = vpop.permute.xlu0 %258 }
 0x102   :  { %v123_v14 = vsub.f32 0.0, %v121_v12 }
 0x103   :  { %v124_v15 = vmul.f32 1.442695, %v122_v13 }
 0x104   :  { %v126_v16 = vmul.f32 1.442695, %v123_v14 }
 0x105   :  { %421 = vpow2.f32 %v124_v15 }
 0x106   :  { %423 = vpow2.f32 %v126_v16 }
 0x10f   :  { %v422_v17 = vpop.eup %421 }
 0x110   :  { %v424_v18 = vpop.eup %423  ;;  %v128_v19 = vadd.f32 1.0, %v422_v17  ;;  %v131_v21 = vmul.f32 -0.5, %v422_v17  ;;  %v134_v25 = vand.u32 2147483647, %v422_v17 }
 0x111   :  { %v137_v20 = vadd.f32 1.0, %v424_v18  ;;  %v140_v22 = vmul.f32 -0.5, %v424_v18  ;;  %v143_v26 = vand.u32 2147483647, %v424_v18 }
 0x112   :  { %425 = vlog2.f32 %v128_v19  ;;  %v132_v23 = vadd.f32 1.0, %v131_v21  ;;  %vm135_vm1 = vcmp.lt.f32.partialorder %v134_v25, 0.0004427343 }
 0x113   :  { %427 = vlog2.f32 %v137_v20  ;;  %v141_v24 = vadd.f32 1.0, %v140_v22  ;;  %vm144_vm2 = vcmp.lt.f32.partialorder %v143_v26, 0.0004427343 }
 0x114   :  { %v133_v30 = vmul.f32 %v422_v17, %v132_v23 }
 0x115   :  { %v142_v32 = vmul.f32 %v424_v18, %v141_v24 }
 0x11c   :  { %v426_v27 = vpop.eup %425 }
 0x11d   :  { %v428_v28 = vpop.eup %427  ;;  %v130_v29 = vmul.f32 0.6931472, %v426_v27 }
 0x11e   :  { %v139_v31 = vmul.f32 0.6931472, %v428_v28 }
 0x11f   :  { %v136_v34 = vsel %vm135_vm1, %v133_v30, %v130_v29  ;;  %v525_v29 = vmov 1966171168  }
 0x120   :  { %v145_v36 = vsel %vm144_vm2, %v142_v32, %v139_v31  ;;  %v146_v39 = vadd.f32 %v136_v34, %v118_v35  ;;  %v370_v30 = vunpack.c.l.s4 %v525_v29  ;;  %v372_v31 = vlaneseq }
 0x121   :  { %v147_v37 = vadd.f32 %v145_v36, %v119_v33 }
 0x122   :  { %v373_v40 = vshrl.u32 %v372_v31, 7  ;;  %vm386_vm7 = vcmp.lt.s32.totalorder %v372_v31, 256 }
 0x123   :  { %156 = vmatprep.subr.mxu1 %v147_v37 }
 0x124   :  { %157 = vmatpush1.msra.mxu1 %v146_v39  ;;  %v371_v39 = vunpack.c.0.s8 %v370_v30 }
 0x125   :  { %406 = vmatmul.mubr.msk.f32.vlgmr.msra.gmra.mrb[0].mxu1 %vm44_vm0, %v153_v38 }
 0x1f8   :  { %v222_v42 = vpop.f32.mrb[0].mxu1 }
 0x1f9   :  { %v223_v43 = vadd.f32 %v222_v42, %v150_v41  ;;  %v224_v44 = vpop.f32.mrb[1].mxu1 }
 0x1fa   :  { %v225_v45 = vadd.f32 %v224_v44, %v150_v41 }
 0x1fb   :  { %v229_v46 = vand.u32 2147483647, %v223_v43  ;;  %v227_v6 = vmax.f32 %v223_v43, 0.0 }
 0x1fc   :  { %v230_v47 = vand.u32 2147483647, %v225_v45  ;;  %v228_v5 = vmax.f32 %v225_v45, 0.0 }
 0x1fd   :  { %v231_v48 = vsub.f32 0.0, %v229_v46 }
 0x1fe   :  { %v232_v49 = vsub.f32 0.0, %v230_v47 }
 0x1ff   :  { %v233_v50 = vmul.f32 1.442695, %v231_v48 }
 0x200   :  { %v235_v51 = vmul.f32 1.442695, %v232_v49  ;;  %v374_v49 = vsub.s32 %v371_v39, %v373_v40 }
 0x201   :  { %429 = vpow2.f32 %v233_v50 }
 0x202   :  { %431 = vpow2.f32 %v235_v51 }
 0x20b   :  { %v430_v52 = vpop.eup %429 }
 0x20c   :  { %v432_v53 = vpop.eup %431  ;;  %v237_v54 = vadd.f32 1.0, %v430_v52  ;;  %v240_v56 = vmul.f32 -0.5, %v430_v52  ;;  %v243_v59 = vand.u32 2147483647, %v430_v52 }
 0x20d   :  { %v246_v55 = vadd.f32 1.0, %v432_v53  ;;  %v249_v57 = vmul.f32 -0.5, %v432_v53  ;;  %v252_v61 = vand.u32 2147483647, %v432_v53 }
 0x20e   :  { %433 = vlog2.f32 %v237_v54  ;;  %v241_v58 = vadd.f32 1.0, %v240_v56  ;;  %vm244_vm3 = vcmp.lt.f32.partialorder %v243_v59, 0.0004427343 }
 0x20f   :  { %435 = vlog2.f32 %v246_v55  ;;  %v250_v60 = vadd.f32 1.0, %v249_v57  ;;  %vm253_vm4 = vcmp.lt.f32.partialorder %v252_v61, 0.0004427343 }
 0x210   :  { %v242_v1 = vmul.f32 %v430_v52, %v241_v58 }
 0x211   :  { %v251_v3 = vmul.f32 %v432_v53, %v250_v60 }
 0x218   :  { %v434_v62 = vpop.eup %433 }
 0x219   :  { %v436_v63 = vpop.eup %435  ;;  %v239_v0 = vmul.f32 0.6931472, %v434_v62 }
 0x21a   :  { %v248_v2 = vmul.f32 0.6931472, %v436_v63 }
 0x21b   :  { %v245_v4 = vsel %vm244_vm3, %v242_v1, %v239_v0 }
 0x21c   :  { %v254_v7 = vsel %vm253_vm4, %v251_v3, %v248_v2  ;;  %v255_v9 = vadd.f32 %v245_v4, %v227_v6 }
 0x21d   :  { %v256_v8 = vadd.f32 %v254_v7, %v228_v5 }
 0x21f   :  { %265 = vmatprep.subr.mxu0 %v256_v8 }
 0x220   :  { %266 = vmatpush1.msra.mxu0 %v255_v9 }
 0x221   :  { %407 = vmatmul.mubr.msk.f32.vlgmr.msra.gmra.mrb[2].mxu0 %vm44_vm0, %v262_v10 }
 0x2f4   :  { %v331_v12 = vpop.f32.mrb[2].mxu0 }
 0x2f5   :  { %v332_v13 = vadd.f32 %v331_v12, %v259_v11  ;;  %v333_v14 = vpop.f32.mrb[3].mxu0 }
 0x2f6   :  { %v334_v15 = vadd.f32 %v333_v14, %v259_v11 }
 0x2f7   :  { %v338_v16 = vand.u32 2147483647, %v332_v13  ;;  %v336_v41 = vmax.f32 %v332_v13, 0.0 }
 0x2f8   :  { %v339_v17 = vand.u32 2147483647, %v334_v15  ;;  %v337_v45 = vmax.f32 %v334_v15, 0.0 }
 0x2f9   :  { %v340_v18 = vsub.f32 0.0, %v338_v16 }
 0x2fa   :  { %v341_v19 = vsub.f32 0.0, %v339_v17 }
 0x2fb   :  { %v342_v20 = vmul.f32 1.442695, %v340_v18 }
 0x2fc   :  { %v344_v21 = vmul.f32 1.442695, %v341_v19 }
 0x2fd   :  { %437 = vpow2.f32 %v342_v20 }
 0x2fe   :  { %439 = vpow2.f32 %v344_v21 }
 0x307   :  { %v438_v22 = vpop.eup %437 }
 0x308   :  { %v440_v23 = vpop.eup %439  ;;  %v346_v24 = vadd.f32 1.0, %v438_v22  ;;  %v349_v26 = vmul.f32 -0.5, %v438_v22  ;;  %v352_v32 = vand.u32 2147483647, %v438_v22 }
 0x309   :  { %v355_v25 = vadd.f32 1.0, %v440_v23  ;;  %v358_v27 = vmul.f32 -0.5, %v440_v23  ;;  %v361_v34 = vand.u32 2147483647, %v440_v23 }
 0x30a   :  { %441 = vlog2.f32 %v346_v24  ;;  %v350_v28 = vadd.f32 1.0, %v349_v26  ;;  %vm353_vm5 = vcmp.lt.f32.partialorder %v352_v32, 0.0004427343 }
 0x30b   :  { %443 = vlog2.f32 %v355_v25  ;;  %v359_v33 = vadd.f32 1.0, %v358_v27  ;;  %vm362_vm6 = vcmp.lt.f32.partialorder %v361_v34, 0.0004427343 }
 0x30c   :  { %v351_v38 = vmul.f32 %v438_v22, %v350_v28 }
 0x30d   :  { %v360_v43 = vmul.f32 %v440_v23, %v359_v33 }
 0x314   :  { %v442_v35 = vpop.eup %441 }
 0x315   :  { %v444_v36 = vpop.eup %443  ;;  %v348_v37 = vmul.f32 0.6931472, %v442_v35 }
 0x316   :  { %v357_v42 = vmul.f32 0.6931472, %v444_v36 }
 0x317   :  { %v354_v44 = vsel %vm353_vm5, %v351_v38, %v348_v37 }
 0x318   :  { %v364_v46 = vadd.f32 %v354_v44, %v336_v41  ;;  %v363_v47 = vsel %vm362_vm6, %v360_v43, %v357_v42 }
 0x319   :  { %v365_v48 = vadd.f32 %v363_v47, %v337_v45 }
 0x31b   :  { %v368_v50 = vcombine.low %v364_v46, %v365_v48 }
 0x31d   :  { %v375_v51 = vrot.slane %v368_v50, %v374_v49 }
 0x31f   :  { %v382_v52 = vrot.slane %v375_v51, %v374_v49 }
 0x321   :  { %388 = vst.msk [vmem:[#allocation7] sm:$0x3] %vm386_vm7, %v382_v52 }
 0x322   :  { %500 = shalt.err (!%p497_p6)
}
 0x323   :  { %s501_s10 = scalar_lea.hbm %s583_s2, 32 }
 0x324   :  { %p502_p7 = scmp.ne.s32.totalorder %s583_s2, %s501_s10  ;;  %p505_p8 = scmp.lt.u32.totalorder %s501_s10, %s583_s2 }
 0x326   :  { %p507_p9 = pnand %p505_p8, %p502_p7 }
 0x328   :  { %510 = shalt.err (!%p507_p9)
}
 0x329   :  { %398 = dma.vmem_to_hbm [thread:$0]  %s396_s6, 32, %s583_s2, [#allocation4]  }
 0x32a   :  { %515 = dma.done.wait [#allocation4], 32  }
 0x32b   :  { %516 = vsyncadd [#allocation4], 4294967264 }
 0x32c   :  { %402 = vsyncpa [#allocation3], 1 }
 0x32d   :  { %403 = vsyncpa [#allocation6], 1 }
 0x32e   :  { %404 = vsyncpa [#allocation4], 1 }

</bundles_post_ra>
